<compile_context>
chip_gen: v7x
topology: tpu7x:2x2x1
jax: 0.10.0
libtpu: 0.0.40
codegen_flags: <defaults>
</compile_context>

<pallas_src>
import functools

import jax
import jax.numpy as jnp
from jax.experimental import pallas as pl
from jax.experimental.pallas import tpu as pltpu


def _round_up(x, m):
    return ((x + m - 1) // m) * m


def _head_layout(input_dim, adapter_hidden_size):
    """Column layout of the six fused generator heads inside (.., n_pad).

    Large heads (down W, up W) each start at a 128-aligned offset; the four
    small heads (down b, up b, ln W, ln b) share one 128-aligned segment.
    """
    d, h = input_dim, adapter_hidden_size
    down_w_off = 0
    up_w_off = _round_up(d * h, 128)
    small_off = up_w_off + _round_up(h * d, 128)
    down_b_off = small_off
    up_b_off = down_b_off + h
    ln_w_off = up_b_off + d
    ln_b_off = ln_w_off + d
    n_pad = small_off + _round_up(h + 3 * d, 128)
    return {
        "down_w": (down_w_off, d * h),
        "up_w": (up_w_off, h * d),
        "down_b": (down_b_off, h),
        "up_b": (up_b_off, d),
        "ln_w": (ln_w_off, d),
        "ln_b": (ln_b_off, d),
        "n_pad": n_pad,
    }


def _choose_tile_n(n_pad, max_tile=4096):
    """Lane-aligned column tile: single block for small n_pad, otherwise the
    largest 128-multiple divisor <= max_tile, preferring an even tile count
    (v7x 2-TC balance)."""
    assert n_pad % 128 == 0
    if n_pad <= max_tile:
        return n_pad
    groups = n_pad // 128
    best = 128
    for g in range(2, groups + 1):
        if groups % g:
            continue
        t = (groups // g) * 128
        if t <= max_tile:
            if g % 2 == 0:
                return t
            best = max(best, t)
    return best


def _hypernet_kernel(e_ref, w_all_ref, b_all_ref, out_ref):
    # One MXU matmul per column tile: OUT = E @ W_tile + b_tile.
    # f32 accumulation on the MXU, bf16 store (halves HBM writeback).
    out_ref[...] = (
        jnp.dot(e_ref[...], w_all_ref[...], preferred_element_type=jnp.float32)
        + b_all_ref[...]
    ).astype(out_ref.dtype)


def adapter_hypernet_pallas(concat_emb, params, *, input_dim, adapter_hidden_size,
                            max_tile_n=4096):
    """Batched AdapterHyperNet forward.

    concat_emb: (M, 3*T_in) float32 — one row per (task, layer_id, position_id).
    Returns a dict mirroring AdapterHyperNetOuput with a leading batch dim M.
    """
    w_emb = params["w_emb"]      # (3*T_in, T)   bf16
    b_emb = params["b_emb"]      # (1, T)        f32
    w_all = params["w_all"]      # (T, n_pad)    bf16, per _head_layout
    b_all = params["b_all"]      # (1, n_pad)    f32

    m = concat_emb.shape[0]
    t = w_emb.shape[1]
    n_pad = w_all.shape[1]

    # Stage 1 (task_embedding_hypernet) in plain XLA — tiny, keeps the kernel a
    # pure weight-streaming matmul with no serial MXU dependency per tile.
    e = (jnp.dot(concat_emb.astype(w_emb.dtype), w_emb,
                 preferred_element_type=jnp.float32) + b_emb)
    e = e.astype(jnp.bfloat16)

    m_pad = _round_up(m, 16)     # bf16 sublane packing: 16 rows per packed vreg
    if m_pad != m:
        e = jnp.pad(e, ((0, m_pad - m), (0, 0)))

    tile_n = _choose_tile_n(n_pad, max_tile_n)
    grid = (n_pad // tile_n,)

    flops = 2 * m_pad * t * n_pad
    bytes_accessed = (m_pad * t * 2            # E (bf16)
                      + w_all.size * 2         # fused weights (bf16)
                      + b_all.size * 4         # fused biases (f32)
                      + m_pad * n_pad * 2)     # output (bf16)

    out = pl.pallas_call(
        _hypernet_kernel,
        out_shape=jax.ShapeDtypeStruct((m_pad, n_pad), jnp.bfloat16),
        grid_spec=pltpu.PrefetchScalarGridSpec(
            num_scalar_prefetch=0,
            grid=grid,
            in_specs=[
                pl.BlockSpec((m_pad, t), lambda j: (0, 0)),    # E   (resident)
                pl.BlockSpec((t, tile_n), lambda j: (0, j)),   # W column tile
                pl.BlockSpec((1, tile_n), lambda j: (0, j)),   # b column tile
            ],
            out_specs=pl.BlockSpec((m_pad, tile_n), lambda j: (0, j)),
        ),
        compiler_params=pltpu.CompilerParams(
            dimension_semantics=("parallel",)),
        cost_estimate=pl.CostEstimate(
            flops=flops, transcendentals=0, bytes_accessed=bytes_accessed),
    )(e, w_all, b_all)

    out = out[:m].astype(jnp.float32)   # drop M padding; present f32 like the module

    lay = _head_layout(input_dim, adapter_hidden_size)
    d, h = input_dim, adapter_hidden_size

    def seg(name):
        off, width = lay[name]
        return out[:, off:off + width]

    return {
        # PyTorch: weight_generator(emb).view(output_dim, input_dim)
        "down_sampler_weight": seg("down_w").reshape(m, h, d),
        "down_sampler_bias": seg("down_b"),
        "up_sampler_weight": seg("up_w").reshape(m, d, h),
        "up_sampler_bias": seg("up_b"),
        "layer_norm_weight": seg("ln_w"),
        "layer_norm_bias": seg("ln_b"),
    }


def init_params(key, *, task_embedding_input_size, task_embedding_size,
                adapter_hidden_size, input_dim, num_hidden_layers, task_names,
                weight_dtype=jnp.bfloat16):
    """Deterministic synthetic initialization of every parameter the module owns."""
    t_in = task_embedding_input_size
    t = task_embedding_size
    h = adapter_hidden_size
    d = input_dim
    task_list = task_names.split(",")

    keys = iter(jax.random.split(key, 64))

    def nrm(k, shape, scale=0.02):
        return (scale * jax.random.normal(k, shape)).astype(jnp.float32)

    params = {
        "layer_id_embeddings": nrm(next(keys), (num_hidden_layers, t_in), 1.0),
        "position_id_embeddings": nrm(next(keys), (2, t_in), 1.0),
        "task_to_embeddings": {
            name: nrm(k, (t_in,), 1.0)
            for name, k in zip(task_list, jax.random.split(next(keys), len(task_list)))
        },
    }

    # task_embedding_hypernet: Linear(3*T_in -> T), stored (in, out).
    params["w_emb"] = nrm(next(keys), (3 * t_in, t)).astype(weight_dtype)
    params["b_emb"] = nrm(next(keys), (1, t))          # bias stays f32

    # Six generator heads fused column-wise per _head_layout.
    lay = _head_layout(d, h)
    n_pad = lay["n_pad"]
    w_all = jnp.zeros((t, n_pad), jnp.float32)
    b_all = jnp.zeros((n_pad,), jnp.float32)
    for name in ("down_w", "down_b", "up_w", "up_b", "ln_w", "ln_b"):
        off, width = lay[name]
        w_all = w_all.at[:, off:off + width].set(nrm(next(keys), (t, width)))
        b_all = b_all.at[off:off + width].set(nrm(next(keys), (width,)))

    params["w_all"] = w_all.astype(weight_dtype)
    params["b_all"] = b_all[None, :]                    # (1, n_pad) f32
    return params


def get_embedding(params, task_name, layer_id, position_id):
    """Mirrors AdapterHyperNet.get_embedding up to (not incl.) the hypernet Linear."""
    task_embedding = params["task_to_embeddings"][task_name]            # (T_in,)
    layer_embedding = params["layer_id_embeddings"][layer_id]           # (T_in,)
    position_embedding = params["position_id_embeddings"][position_id]  # (T_in,)
    embedding = jnp.concatenate(
        [task_embedding.reshape(1, -1),
         layer_embedding.reshape(1, -1),
         position_embedding.reshape(1, -1)], axis=0)                    # (3, T_in)
    return embedding.reshape(1, -1)                                     # (1, 3*T_in)


def forward(params, task_name, layer_id, position_id, *, input_dim, adapter_hidden_size):
    """Single-triple forward matching the PyTorch module's forward() semantics."""
    concat_emb = get_embedding(params, task_name, layer_id, position_id)
    batched = adapter_hypernet_pallas(
        concat_emb, params, input_dim=input_dim, adapter_hidden_size=adapter_hidden_size)
    return {k: v[0] for k, v in batched.items()}


if __name__ == "__main__":
    TASK_EMBEDDING_INPUT_SIZE = 32
    TASK_EMBEDDING_SIZE = 32
    ADAPTER_HIDDEN_SIZE = 8
    INPUT_DIM = 16
    NUM_HIDDEN_LAYERS = 4
    TASK_NAMES = "mnli,sst2"

    key = jax.random.PRNGKey(0)
    params = init_params(
        key,
        task_embedding_input_size=TASK_EMBEDDING_INPUT_SIZE,
        task_embedding_size=TASK_EMBEDDING_SIZE,
        adapter_hidden_size=ADAPTER_HIDDEN_SIZE,
        input_dim=INPUT_DIM,
        num_hidden_layers=NUM_HIDDEN_LAYERS,
        task_names=TASK_NAMES,
    )

    # Batch all (task, layer, position) combos -> M = 2*4*2 = 16 rows.
    combos = [(task, l, p)
              for task in TASK_NAMES.split(",")
              for l in range(NUM_HIDDEN_LAYERS)
              for p in range(2)]
    concat_emb_batch = jnp.concatenate(
        [get_embedding(params, t, l, p) for (t, l, p) in combos], axis=0)  # (16, 96)

    fwd_batched = jax.jit(functools.partial(
        adapter_hypernet_pallas,
        input_dim=INPUT_DIM,
        adapter_hidden_size=ADAPTER_HIDDEN_SIZE,
    ))
    out = fwd_batched(concat_emb_batch, params)
    out = jax.block_until_ready(out)

    # ---- Reference (plain JAX, same bf16 weights / f32 acc / bf16 store) ----
    e_ref = (jnp.dot(concat_emb_batch.astype(params["w_emb"].dtype), params["w_emb"],
                     preferred_element_type=jnp.float32) + params["b_emb"]
             ).astype(jnp.bfloat16)
    flat_ref = (jnp.dot(e_ref, params["w_all"], preferred_element_type=jnp.float32)
                + params["b_all"]).astype(jnp.bfloat16).astype(jnp.float32)

    d, h = INPUT_DIM, ADAPTER_HIDDEN_SIZE
    lay = _head_layout(d, h)
    m = concat_emb_batch.shape[0]

    def rseg(name):
        off, width = lay[name]
        return flat_ref[:, off:off + width]

    refs = {
        "down_sampler_weight": rseg("down_w").reshape(m, h, d),
        "down_sampler_bias": rseg("down_b"),
        "up_sampler_weight": rseg("up_w").reshape(m, d, h),
        "up_sampler_bias": rseg("up_b"),
        "layer_norm_weight": rseg("ln_w"),
        "layer_norm_bias": rseg("ln_b"),
    }
    for k in refs:
        assert out[k].shape == refs[k].shape, k
        assert jnp.allclose(out[k], refs[k], atol=1e-3, rtol=1e-3), k

    # ---- Single-triple forward (PyTorch-equivalent signature / shapes) ----
    task_name, layer_id, position_id = "mnli", 2, 1
    single = forward(params, task_name, layer_id, position_id,
                     input_dim=INPUT_DIM, adapter_hidden_size=ADAPTER_HIDDEN_SIZE)
    single = jax.block_until_ready(single)
    assert single["down_sampler_weight"].shape == (h, d)
    assert single["down_sampler_bias"].shape == (h,)
    assert single["up_sampler_weight"].shape == (d, h)
    assert single["up_sampler_bias"].shape == (d,)
    assert single["layer_norm_weight"].shape == (d,)
    assert single["layer_norm_bias"].shape == (d,)
    row = combos.index((task_name, layer_id, position_id))
    for k in refs:
        assert jnp.allclose(single[k], out[k][row], atol=1e-3, rtol=1e-3), k

    print("KERNEL_OK")
</pallas_src>

<mosaic_0001>
module attributes {stable_mosaic.version = 11 : i64} {
  func.func @_hypernet_kernel(%arg0: i32, %arg1: memref<16x32xbf16, #tpu.memory_space<vmem>>, %arg2: memref<32x384xbf16, #tpu.memory_space<vmem>>, %arg3: memref<1x384xf32, #tpu.memory_space<vmem>>, %arg4: memref<16x384xbf16, #tpu.memory_space<vmem>>) attributes {dimension_semantics = [#tpu.dimension_semantics<parallel>], iteration_bounds = array<i64: 1>, scalar_prefetch = 0 : i64, scratch_operands = 0 : i64, tpu.core_type = #tpu.core_type<tc>, window_params = [{pipeline_mode = #tpu.pipeline_mode<synchronous>, transform_indices = @transform_0, window_bounds = array<i64: 16, 32>}, {transform_indices = @transform_1, window_bounds = array<i64: 32, 384>}, {transform_indices = @transform_2, window_bounds = array<i64: 1, 384>}, {transform_indices = @transform_3, window_bounds = array<i64: 16, 384>}]} {
    %c0 = arith.constant 0 : index
    %c0_0 = arith.constant 0 : index
    %0 = vector.load %arg1[%c0, %c0_0] : memref<16x32xbf16, #tpu.memory_space<vmem>>, vector<16x32xbf16>
    %c0_1 = arith.constant 0 : index
    %c0_2 = arith.constant 0 : index
    %1 = vector.load %arg2[%c0_1, %c0_2] : memref<32x384xbf16, #tpu.memory_space<vmem>>, vector<32x384xbf16>
    %cst = arith.constant dense<0.000000e+00> : vector<16x384xf32>
    %2 = tpu.matmul %0, %1, %cst {dimension_numbers = #tpu.dot_dimension_numbers<[1], [0], [0], [1], [0, 0, 1, 1], [], []>} : vector<16x32xbf16>, vector<32x384xbf16>, vector<16x384xf32> -> vector<16x384xf32>
    %c0_3 = arith.constant 0 : index
    %c0_4 = arith.constant 0 : index
    %3 = vector.load %arg3[%c0_3, %c0_4] : memref<1x384xf32, #tpu.memory_space<vmem>>, vector<1x384xf32>
    %4 = vector.broadcast %3 : vector<1x384xf32> to vector<16x384xf32>
    %5 = arith.addf %2, %4 : vector<16x384xf32>
    %6 = arith.truncf %5 : vector<16x384xf32> to vector<16x384xbf16>
    %c0_5 = arith.constant 0 : index
    %c0_6 = arith.constant 0 : index
    %7 = vector.load %arg4[%c0_5, %c0_6] : memref<16x384xbf16, #tpu.memory_space<vmem>>, vector<16x384xbf16>
    tpu.vector_store %arg4[%c0_5, %c0_6], %6 {strides = array<i32>} : memref<16x384xbf16, #tpu.memory_space<vmem>>, vector<16x384xbf16>,
    return
  }
  func.func @transform_0(%arg0: i32) -> (i32, i32) {
    %c0_i32 = arith.constant 0 : i32
    %c0_i32_0 = arith.constant 0 : i32
    %c0_i32_1 = arith.constant 0 : i32
    return %c0_i32, %c0_i32_0 : i32, i32
  }
  func.func @transform_1(%arg0: i32) -> (i32, i32) {
    %c0_i32 = arith.constant 0 : i32
    %c0_i32_0 = arith.constant 0 : i32
    return %c0_i32, %arg0 : i32, i32
  }
  func.func @transform_2(%arg0: i32) -> (i32, i32) {
    %c0_i32 = arith.constant 0 : i32
    %c0_i32_0 = arith.constant 0 : i32
    return %c0_i32, %arg0 : i32, i32
  }
  func.func @transform_3(%arg0: i32) -> (i32, i32) {
    %c0_i32 = arith.constant 0 : i32
    %c0_i32_0 = arith.constant 0 : i32
    return %c0_i32, %arg0 : i32, i32
  }
}

</mosaic_0001>

<bundles_post_ra>
// kernel: adapter_hypernet_pallas.1
= control target key start
LH: loop header
LB: loop body
LE: loop exit
PB: predicated region body
PF: predicated region fallthrough
CT: control target
= control target key end

     0   :  { %v235_v0 = vmov 0.0   ;;  %vm236_vm0 = vmmov 0   ;;  %v237_v3 = vmov 0   ;;  %vm79_vm1 = vcmask 261120   ;;  %s294_s1 = inlined_call_operand.vmem [shape: bf16[32,384], index: 1, kind: input, shape index: {}]   ;;  %s295_s0 = inlined_call_operand.vmem [shape: bf16[16,32], index: 0, kind: input, shape index: {}]   ;;  %s296_s2 = inlined_call_operand.vmem [shape: f32[1,384], index: 2, kind: input, shape index: {}]   ;;  %s297_s3 = inlined_call_operand.vmem [shape: bf16[16,384], index: 3, kind: output, shape index: {}]  }
   0x1   :  { %215 = vmatprep.subr.bf16.mxu1 %v235_v0  ;;  %v226_v1 = vld [vmem:[%s294_s1 + $0x4] ss:$12 sps:$4 sm:$0xff]   ;;  %219 = vmatprep.mubr.msk.bf16.mxu1 %vm236_vm0, %v235_v0  ;;  %v228_v2 = vld [vmem:[%s294_s1 + $0x8] ss:$12 sps:$4 sm:$0xff]   ;;  %v229_v4 = vld [vmem:[%s294_s1] ss:$12 sps:$4 sm:$0xff]   ;;  %v27_v9 = vlaneseq }
   0x2   :  { %115 = vmatprep.mubr.bf16.mxu0 %v237_v3  ;;  %83 = vmatprep.subr.bf16.mxu0 %v226_v1  ;;  %v230_v5 = vld [vmem:[%s294_s1 + $0x1c] ss:$12 sps:$4 sm:$0xff]   ;;  %v232_v6 = vld [vmem:[%s294_s1 + $0x20] ss:$12 sps:$4 sm:$0xff]   ;;  %v233_v7 = vld [vmem:[%s294_s1 + $0x18] ss:$12 sps:$4 sm:$0xff]  }
   0x3   :  { %216 = vmatpush3.bf16.msra.mxu1 %v228_v2  ;;  %84 = vmatpush1.bf16.msra.mxu0 %v229_v4  ;;  %v234_v8 = vld [vmem:[%s295_s0] sm:$0xff]   ;;  %v28_v10 = vshrl.u32 %v27_v9, 7 }
   0x4   :  { %217 = vmatprep.subr.bf16.mxu1 %v235_v0  ;;  %85 = vmatprep.subr.bf16.mxu0 %v230_v5  ;;  %v25_v12 = vld [vmem:[%s296_s2] sm:$0x7] }
   0x5   :  { %v37_v11 = vsub.s32 2, %v28_v10  ;;  %v29_v13 = vsub.s32 0, %v28_v10  ;;  %v33_v14 = vsub.s32 1, %v28_v10 }
   0x7   :  { %218 = vmatpush3.bf16.msra.mxu1 %v232_v6  ;;  %86 = vmatpush1.bf16.msra.mxu0 %v233_v7  ;;  %v38_v15 = vrot.slane %v25_v12, %v37_v11  ;;  %v30_v16 = vrot.slane %v25_v12, %v29_v13  ;;  %v34_v17 = vrot.slane %v25_v12, %v33_v14 }
   0xa   :  { %220 = vmatmul.mubr.msk.bf16.vlgmr.msra.gmra.mrb[0].mxu1 %vm79_vm1, %v234_v8  ;;  %202 = vmatmul.mubr.msk.bf16.vlgmr.msra.gmra.mrb[0].mxu0 %vm79_vm1, %v234_v8 }
  0xdd   :  { %v160_v18 = vpop.f32.mrb[0].mxu1  ;;  %v117_v20 = vpop.f32.mrb[0].mxu0 }
  0xde   :  { %v161_v19 = vadd.f32 %v160_v18, %v38_v15  ;;  %v221_v21 = vpop.f32.mrb[1].mxu1  ;;  %v118_v22 = vadd.f32 %v117_v20, %v30_v16  ;;  %v119_v23 = vpop.f32.mrb[1].mxu0 }
  0xdf   :  { %v163_v24 = vpop.f32.mrb[2].mxu1  ;;  %v120_v26 = vadd.f32 %v119_v23, %v34_v17  ;;  %v121_v28 = vpop.f32.mrb[2].mxu0 }
  0xe0   :  { %v209_v25 = vpack.c.bf16 %v161_v19, %v161_v19  ;;  %v164_v27 = vadd.f32 %v163_v24, %v38_v15  ;;  %v222_v29 = vpop.f32.mrb[3].mxu1  ;;  %v122_v30 = vadd.f32 %v121_v28, %v30_v16  ;;  %v123_v31 = vpop.f32.mrb[3].mxu0 }
  0xe1   :  { %v208_v32 = vpack.c.bf16 %v120_v26, %v118_v22  ;;  %v124_v34 = vadd.f32 %v123_v31, %v34_v17 }
  0xe2   :  { %188 = vst [vmem:[%s297_s3 + $0x8] sm:$0xf] %v209_v25  ;;  %v211_v33 = vpack.c.bf16 %v164_v27, %v164_v27 }
  0xe3   :  { %187 = vst [vmem:[%s297_s3] sm:$0xff] %v208_v32  ;;  %v210_v35 = vpack.c.bf16 %v124_v34, %v122_v30 }
  0xe4   :  { %190 = vst [vmem:[%s297_s3 + $0x14] sm:$0xf] %v211_v33 }
  0xe5   :  { %189 = vst [vmem:[%s297_s3 + $0xc] sm:$0xff] %v210_v35 }

</bundles_post_ra>
